<compile_context>
chip_gen: v7x
topology: tpu7x:2x2x1
jax: 0.10.0
libtpu: 0.0.40
codegen_flags: <defaults>
</compile_context>

<pallas_src>
import functools

import jax
import jax.numpy as jnp
from jax.experimental import pallas as pl
from jax.experimental.pallas import tpu as pltpu


# ----------------------------- Pallas kernel -------------------------------

def _mlp_kernel(u_ref, w1_ref, b1_ref, w2_ref, b2_ref, o_ref):
    # u_ref:  (TILE_P, PACK*F_IN)     bf16  packed node tile (lane-dense)
    # w1_ref: (PACK*F_IN, PACK*F_HID) bf16  block-diagonal, VMEM-resident
    # w2_ref: (PACK*F_HID, PACK*F_OUT) bf16 block-diagonal, VMEM-resident
    # b1/b2:  (1, PACK*F_HID / PACK*F_OUT) f32 tiled biases
    h = jnp.dot(u_ref[...], w1_ref[...], preferred_element_type=jnp.float32)
    h = jnp.tanh(h + b1_ref[...])                       # f32 elementwise (v5e-safe)
    out = jnp.dot(h.astype(w2_ref.dtype), w2_ref[...],
                  preferred_element_type=jnp.float32)
    out = out + b2_ref[...]
    o_ref[...] = out.astype(o_ref.dtype)


# ------------------------------ tiling helpers ------------------------------

_TILE_P_CAP = 4096   # packed rows / grid step: ~2 MiB bf16 I/O per step, so the
                     # ~0.35us fixed step overhead stays small even at v7x HBM speed.


def _round_up(x, m):
    return ((x + m - 1) // m) * m


@functools.lru_cache(maxsize=1)
def _num_tensorcores():
    """TensorCores a 'parallel' grid axis can be sharded over on one device."""
    try:
        info = pltpu.get_tpu_info()
        for attr in ("num_cores", "core_count", "num_cores_per_chip",
                     "tensorcores_per_chip", "num_tensorcores"):
            v = getattr(info, attr, None)
            if isinstance(v, int) and v > 0:
                return max(1, min(int(v), 2))
    except Exception:
        pass
    try:
        kind = jax.devices()[0].device_kind.lower()
        # Megacore chips expose 2 TensorCores behind one device.
        if any(tag in kind for tag in ("v4", "v5p", "v7")):
            return 2
    except Exception:
        pass
    return 1            # v5e / v6e: single TensorCore


def _pack_factor(f_in, f_out, max_pack=32):
    """Smallest p so that p*f_in and p*f_out are both multiples of 128 (else 1)."""
    for p in range(1, max_pack + 1):
        if (p * f_in) % 128 == 0 and (p * f_out) % 128 == 0:
            return p
    return 1


def _choose_tile_p(n_p, num_cores):
    """Packed-row tile size.

    As few grid steps as possible (big tiles amortize the ~0.35us/step overhead);
    on multi-TensorCore chips (megacore) the step count is kept a multiple of the
    core count so the 'parallel' split stays balanced.  Single-core v5e/v6e never
    get a forced split.  Tiles are 16-aligned (bf16 native (16,128) packing).
    """
    n_p = max(1, n_p)
    steps = pl.cdiv(n_p, _TILE_P_CAP)
    if num_cores > 1 and n_p >= 512:
        steps = _round_up(steps, num_cores)
    return max(16, _round_up(pl.cdiv(n_p, steps), 16))


def _vmem_limit_bytes(tile_p, fp_in, fp_hid, fp_out, w_bytes):
    """Scoped-VMEM sized from the actual buffers (with headroom), clamped so it
    stays within every generation's physical VMEM (v7x: 64 MiB)."""
    io = 2 * tile_p * (fp_in + fp_out) * 2      # double-buffered bf16 node tiles
    hid = tile_p * fp_hid * 4                   # f32 hidden intermediate
    need = io + 2 * w_bytes + hid
    return int(min(max(32 << 20, 2 * need), 48 << 20))


def _block_diag(w, p):
    if p == 1:
        return w
    fi, fo = w.shape
    out = jnp.zeros((p * fi, p * fo), w.dtype)
    for k in range(p):
        out = out.at[k * fi:(k + 1) * fi, k * fo:(k + 1) * fo].set(w)
    return out


# ------------------------------ forward wrapper ------------------------------

@functools.partial(jax.jit, static_argnames=("pack",))
def mlp_forward(u, w1p, b1p, w2p, b2p, *, pack):
    n, f_in = u.shape
    fp_in, fp_hid = w1p.shape                 # pack*f_in, pack*f_hid
    fp_out = w2p.shape[1]                     # pack*f_out
    f_hid = fp_hid // pack
    f_out = fp_out // pack

    # Pad node count so it packs into full (tile_p, 128)-style blocks.
    n_p = pl.cdiv(n, pack)
    tile_p = _choose_tile_p(n_p, _num_tensorcores())
    n_p_pad = pl.cdiv(n_p, tile_p) * tile_p
    n_pad = n_p_pad * pack
    if n_pad != n:
        u = jnp.pad(u, ((0, n_pad - n), (0, 0)))
    u_pk = u.reshape(n_p_pad, fp_in)          # contiguous view: lane-dense slab

    grid = (n_p_pad // tile_p,)
    itemsize = u_pk.dtype.itemsize
    w_bytes = ((w1p.size + w2p.size) * w1p.dtype.itemsize
               + (b1p.size + b2p.size) * 4)
    # Advisory cost: *useful* work only (block-diagonal padding excluded).
    flops = 2 * n * (f_in * f_hid + f_hid * f_out)
    bytes_accessed = n_p_pad * (fp_in + fp_out) * itemsize + w_bytes

    out_pk = pl.pallas_call(
        _mlp_kernel,
        out_shape=jax.ShapeDtypeStruct((n_p_pad, fp_out), u.dtype),
        grid=grid,
        in_specs=[
            pl.BlockSpec((tile_p, fp_in), lambda i: (i, 0)),   # packed node tile
            pl.BlockSpec((fp_in, fp_hid), lambda i: (0, 0)),   # W1 (resident)
            pl.BlockSpec((1, fp_hid), lambda i: (0, 0)),       # b1
            pl.BlockSpec((fp_hid, fp_out), lambda i: (0, 0)),  # W2 (resident)
            pl.BlockSpec((1, fp_out), lambda i: (0, 0)),       # b2
        ],
        out_specs=pl.BlockSpec((tile_p, fp_out), lambda i: (i, 0)),
        compiler_params=pltpu.CompilerParams(
            dimension_semantics=("parallel",),
            vmem_limit_bytes=_vmem_limit_bytes(tile_p, fp_in, fp_hid, fp_out,
                                               w_bytes)),
        cost_estimate=pl.CostEstimate(
            flops=flops,
            transcendentals=n * f_hid,
            bytes_accessed=bytes_accessed),
    )(u_pk, w1p, b1p, w2p, b2p)

    out = out_pk.reshape(n_pad, f_out)        # free contiguous un-pack
    # NOTE: padded rows hold tanh(b1)@W2+b2 garbage; they must be sliced off here.
    return out[:n] if n_pad != n else out


# --------------------------- module equivalents -----------------------------

class MLPModel:
    """Concrete `model` wrapped by DynamicsFunction: 2-layer node-wise MLP.

    HBM-resident weights/activations are stored in bf16 (f32 accumulation in the
    kernel); biases stay f32.  Parameters are pre-packed once into block-diagonal
    form so the kernel's I/O is lane-dense.
    """

    def __init__(self, key, in_dim, hidden_dim, out_dim,
                 storage_dtype=jnp.bfloat16):
        k1, k2, k3, k4 = jax.random.split(key, 4)
        w1 = (jax.random.normal(k1, (in_dim, hidden_dim), jnp.float32)
              / jnp.sqrt(in_dim)).astype(storage_dtype)
        w2 = (jax.random.normal(k2, (hidden_dim, out_dim), jnp.float32)
              / jnp.sqrt(hidden_dim)).astype(storage_dtype)
        b1 = 0.1 * jax.random.normal(k3, (1, hidden_dim), jnp.float32)
        b2 = 0.1 * jax.random.normal(k4, (1, out_dim), jnp.float32)

        # f32 copies of the exact same (bf16-rounded) values for the reference path.
        self.w1 = w1.astype(jnp.float32)
        self.w2 = w2.astype(jnp.float32)
        self.b1 = b1
        self.b2 = b2

        # Node packing: `pack` nodes per packed row -> 128-wide lane-dense I/O.
        p = _pack_factor(in_dim, out_dim)
        self.pack = p
        self.w1p = _block_diag(w1, p)                      # bf16 block-diag
        self.w2p = _block_diag(w2, p)
        self.b1p = jnp.tile(b1, (1, p)).astype(jnp.float32)
        self.b2p = jnp.tile(b2, (1, p)).astype(jnp.float32)

    def __call__(self, u, **kwargs):
        # kwargs (self.params of DynamicsFunction) accepted for API parity.
        return mlp_forward(u, self.w1p, self.b1p, self.w2p, self.b2p,
                           pack=self.pack)

    def reference(self, u):
        uh = u.astype(jnp.float32)
        h = jnp.tanh(uh @ self.w1 + self.b1)
        return h @ self.w2 + self.b2


class DynamicsFunction:
    """JAX/Pallas equivalent of the PyTorch DynamicsFunction wrapper."""

    def __init__(self, model, params=None):
        self.model = model
        self.params = {} if params is None else params
        print('self.params', self.params)

    def forward(self, t, u):
        # t is ignored, exactly as in the PyTorch module's forward.
        return self.model(u, **self.params)

    __call__ = forward

    def update_params(self, params):
        self.params.update(params)


# --------------------------------- main --------------------------------------

if __name__ == "__main__":
    key = jax.random.PRNGKey(0)
    k_model, k_u = jax.random.split(key)

    N, F_IN, F_HID, F_OUT = 256, 32, 64, 32  # small node-feature shapes
    model = MLPModel(k_model, F_IN, F_HID, F_OUT)
    dyn = DynamicsFunction(model, params={})

    u = jax.random.normal(k_u, (N, F_IN), jnp.float32).astype(jnp.bfloat16)
    t = jnp.float32(0.0)  # unused, mirrors the ODE-time argument

    out = jax.block_until_ready(dyn(t, u))

    # Correctness check against pure-JAX f32 reference of the wrapped model
    # (same bf16-stored parameters; tolerance loosened for bf16 activations).
    ref = model.reference(u)
    assert out.shape == (N, F_OUT)
    assert jnp.allclose(out.astype(jnp.float32), ref, atol=3e-2, rtol=3e-2), (
        f"max abs err {jnp.max(jnp.abs(out.astype(jnp.float32) - ref))}")

    print("KERNEL_OK")
</pallas_src>

<mosaic_0001>
module attributes {stable_mosaic.version = 11 : i64} {
  func.func @_mlp_kernel(%arg0: i32, %arg1: memref<64x128xbf16, #tpu.memory_space<vmem>>, %arg2: memref<128x256xbf16, #tpu.memory_space<vmem>>, %arg3: memref<1x256xf32, #tpu.memory_space<vmem>>, %arg4: memref<256x128xbf16, #tpu.memory_space<vmem>>, %arg5: memref<1x128xf32, #tpu.memory_space<vmem>>, %arg6: memref<64x128xbf16, #tpu.memory_space<vmem>>) attributes {dimension_semantics = [#tpu.dimension_semantics<parallel>], iteration_bounds = array<i64: 1>, scalar_prefetch = 0 : i64, scratch_operands = 0 : i64, tpu.core_type = #tpu.core_type<tc>, window_params = [{transform_indices = @transform_0, window_bounds = array<i64: 64, 128>}, {pipeline_mode = #tpu.pipeline_mode<synchronous>, transform_indices = @transform_1, window_bounds = array<i64: 128, 256>}, {pipeline_mode = #tpu.pipeline_mode<synchronous>, transform_indices = @transform_2, window_bounds = array<i64: 1, 256>}, {pipeline_mode = #tpu.pipeline_mode<synchronous>, transform_indices = @transform_3, window_bounds = array<i64: 256, 128>}, {pipeline_mode = #tpu.pipeline_mode<synchronous>, transform_indices = @transform_4, window_bounds = array<i64: 1, 128>}, {transform_indices = @transform_5, window_bounds = array<i64: 64, 128>}]} {
    %c0 = arith.constant 0 : index
    %c0_0 = arith.constant 0 : index
    %0 = vector.load %arg1[%c0, %c0_0] : memref<64x128xbf16, #tpu.memory_space<vmem>>, vector<64x128xbf16>
    %c0_1 = arith.constant 0 : index
    %c0_2 = arith.constant 0 : index
    %1 = vector.load %arg2[%c0_1, %c0_2] : memref<128x256xbf16, #tpu.memory_space<vmem>>, vector<128x256xbf16>
    %cst = arith.constant dense<0.000000e+00> : vector<64x256xf32>
    %2 = tpu.matmul %0, %1, %cst {dimension_numbers = #tpu.dot_dimension_numbers<[1], [0], [0], [1], [0, 0, 1, 1], [], []>} : vector<64x128xbf16>, vector<128x256xbf16>, vector<64x256xf32> -> vector<64x256xf32>
    %c0_3 = arith.constant 0 : index
    %c0_4 = arith.constant 0 : index
    %3 = vector.load %arg3[%c0_3, %c0_4] : memref<1x256xf32, #tpu.memory_space<vmem>>, vector<1x256xf32>
    %4 = vector.broadcast %3 : vector<1x256xf32> to vector<64x256xf32>
    %5 = arith.addf %2, %4 : vector<64x256xf32>
    %6 = math.tanh %5 : vector<64x256xf32>
    %7 = arith.truncf %6 : vector<64x256xf32> to vector<64x256xbf16>
    %c0_5 = arith.constant 0 : index
    %c0_6 = arith.constant 0 : index
    %8 = vector.load %arg4[%c0_5, %c0_6] : memref<256x128xbf16, #tpu.memory_space<vmem>>, vector<256x128xbf16>
    %cst_7 = arith.constant dense<0.000000e+00> : vector<64x128xf32>
    %9 = tpu.matmul %7, %8, %cst_7 {dimension_numbers = #tpu.dot_dimension_numbers<[1], [0], [0], [1], [0, 0, 1, 1], [], []>} : vector<64x256xbf16>, vector<256x128xbf16>, vector<64x128xf32> -> vector<64x128xf32>
    %c0_8 = arith.constant 0 : index
    %c0_9 = arith.constant 0 : index
    %10 = vector.load %arg5[%c0_8, %c0_9] : memref<1x128xf32, #tpu.memory_space<vmem>>, vector<1x128xf32>
    %11 = vector.broadcast %10 : vector<1x128xf32> to vector<64x128xf32>
    %12 = arith.addf %9, %11 : vector<64x128xf32>
    %13 = arith.truncf %12 : vector<64x128xf32> to vector<64x128xbf16>
    %c0_10 = arith.constant 0 : index
    %c0_11 = arith.constant 0 : index
    %14 = vector.load %arg6[%c0_10, %c0_11] : memref<64x128xbf16, #tpu.memory_space<vmem>>, vector<64x128xbf16>
    tpu.vector_store %arg6[%c0_10, %c0_11], %13 {strides = array<i32>} : memref<64x128xbf16, #tpu.memory_space<vmem>>, vector<64x128xbf16>,
    return
  }
  func.func @transform_0(%arg0: i32) -> (i32, i32) {
    %c0_i32 = arith.constant 0 : i32
    %c0_i32_0 = arith.constant 0 : i32
    return %arg0, %c0_i32 : i32, i32
  }
  func.func @transform_1(%arg0: i32) -> (i32, i32) {
    %c0_i32 = arith.constant 0 : i32
    %c0_i32_0 = arith.constant 0 : i32
    %c0_i32_1 = arith.constant 0 : i32
    return %c0_i32, %c0_i32_0 : i32, i32
  }
  func.func @transform_2(%arg0: i32) -> (i32, i32) {
    %c0_i32 = arith.constant 0 : i32
    %c0_i32_0 = arith.constant 0 : i32
    %c0_i32_1 = arith.constant 0 : i32
    return %c0_i32, %c0_i32_0 : i32, i32
  }
  func.func @transform_3(%arg0: i32) -> (i32, i32) {
    %c0_i32 = arith.constant 0 : i32
    %c0_i32_0 = arith.constant 0 : i32
    %c0_i32_1 = arith.constant 0 : i32
    return %c0_i32, %c0_i32_0 : i32, i32
  }
  func.func @transform_4(%arg0: i32) -> (i32, i32) {
    %c0_i32 = arith.constant 0 : i32
    %c0_i32_0 = arith.constant 0 : i32
    %c0_i32_1 = arith.constant 0 : i32
    return %c0_i32, %c0_i32_0 : i32, i32
  }
  func.func @transform_5(%arg0: i32) -> (i32, i32) {
    %c0_i32 = arith.constant 0 : i32
    %c0_i32_0 = arith.constant 0 : i32
    return %arg0, %c0_i32 : i32, i32
  }
}

</mosaic_0001>

<bundles_post_ra>
// kernel: mlp_forward.1
= control target key start
LH: loop header
LB: loop body
LE: loop exit
PB: predicated region body
PF: predicated region fallthrough
CT: control target
= control target key end

     0   :  { %v695_v1 = vmov 0   ;;  %v47_v37 = vlaneseq  ;;  %s852_s1 = inlined_call_operand.vmem [shape: bf16[128,256], index: 1, kind: input, shape index: {}]   ;;  %s853_s0 = inlined_call_operand.vmem [shape: bf16[64,128], index: 0, kind: input, shape index: {}]   ;;  %s854_s3 = inlined_call_operand.vmem [shape: bf16[256,128], index: 3, kind: input, shape index: {}]   ;;  %s855_s2 = inlined_call_operand.vmem [shape: f32[1,256], index: 2, kind: input, shape index: {}]   ;;  %s856_s4 = inlined_call_operand.vmem [shape: f32[1,128], index: 4, kind: input, shape index: {}]   ;;  %s857_s5 = inlined_call_operand.vmem [shape: bf16[64,128], index: 5, kind: output, shape index: {}]  }
   0x1   :  { %v619_v0 = vld [vmem:[%s852_s1 + $0x4] ss:$8 sps:$4 sm:$0xff]   ;;  %193 = vmatprep.mubr.bf16.mxu0 %v695_v1  ;;  %v621_v2 = vld [vmem:[%s852_s1] ss:$8 sps:$4 sm:$0xff]   ;;  %v622_v3 = vld [vmem:[%s852_s1 + $0x14] ss:$8 sps:$4 sm:$0xff]  }
   0x2   :  { %161 = vmatprep.subr.bf16.mxu0 %v619_v0  ;;  %v624_v4 = vld [vmem:[%s852_s1 + $0x10] ss:$8 sps:$4 sm:$0xff]   ;;  %v625_v5 = vld [vmem:[%s852_s1 + $0x24] ss:$8 sps:$4 sm:$0xff]   ;;  %v627_v6 = vld [vmem:[%s852_s1 + $0x20] ss:$8 sps:$4 sm:$0xff]  }
   0x3   :  { %162 = vmatpush1.bf16.msra.mxu0 %v621_v2  ;;  %v628_v7 = vld [vmem:[%s852_s1 + $0x34] ss:$8 sps:$4 sm:$0xff]   ;;  %v630_v8 = vld [vmem:[%s852_s1 + $0x30] ss:$8 sps:$4 sm:$0xff]   ;;  %v631_v9 = vld [vmem:[%s852_s1 + $0x44] ss:$8 sps:$4 sm:$0xff]  }
   0x4   :  { %163 = vmatprep.subr.bf16.mxu0 %v622_v3  ;;  %v633_v10 = vld [vmem:[%s852_s1 + $0x40] ss:$8 sps:$4 sm:$0xff]   ;;  %v634_v11 = vld [vmem:[%s852_s1 + $0x54] ss:$8 sps:$4 sm:$0xff]   ;;  %v636_v14 = vld [vmem:[%s852_s1 + $0x50] ss:$8 sps:$4 sm:$0xff]  }
   0x5   :  { %v647_v12 = vld [vmem:[%s854_s3 + $0x40] sm:$0xff]   ;;  %v649_v15 = vld [vmem:[%s854_s3 + $0x48] sm:$0xff]   ;;  %v651_v17 = vld [vmem:[%s854_s3 + $0x50] sm:$0xff]   ;;  %v48_v38 = vshrl.u32 %v47_v37, 7 }
   0x6   :  { %v648_v13 = vld [vmem:[%s854_s3] sm:$0xff]   ;;  %578 = vmatprep.subr.bf16.mxu1 %v647_v12  ;;  %v650_v16 = vld [vmem:[%s854_s3 + $0x8] sm:$0xff]   ;;  %v652_v19 = vld [vmem:[%s854_s3 + $0x10] sm:$0xff]  }
   0x7   :  { %164 = vmatpush1.bf16.msra.mxu0 %v624_v4  ;;  %579 = vmatpush3.bf16.msra.mxu1 %v648_v13  ;;  %v637_v18 = vld [vmem:[%s852_s1 + $0x64] ss:$8 sps:$4 sm:$0xff]   ;;  %v639_v20 = vld [vmem:[%s852_s1 + $0x60] ss:$8 sps:$4 sm:$0xff]   ;;  %v640_v21 = vld [vmem:[%s852_s1 + $0x74] ss:$8 sps:$4 sm:$0xff]  }
   0x8   :  { %165 = vmatprep.subr.bf16.mxu0 %v625_v5  ;;  %580 = vmatprep.subr.bf16.mxu1 %v649_v15  ;;  %v642_v22 = vld [vmem:[%s852_s1 + $0x70] ss:$8 sps:$4 sm:$0xff]   ;;  %v643_v23 = vld [vmem:[%s853_s0] sm:$0xff]   ;;  %v644_v24 = vld [vmem:[%s853_s0 + $0x8] sm:$0xff]   ;;  %v49_v39 = vsub.s32 0, %v48_v38  ;;  %v53_v41 = vsub.s32 1, %v48_v38 }
   0x9   :  { %v645_v25 = vld [vmem:[%s853_s0 + $0x10] sm:$0xff]   ;;  %v646_v26 = vld [vmem:[%s853_s0 + $0x18] sm:$0xff]   ;;  %v655_v29 = vld [vmem:[%s854_s3 + $0x60] sm:$0xff]  }
   0xa   :  { %v653_v27 = vld [vmem:[%s854_s3 + $0x58] sm:$0xff]   ;;  %v656_v30 = vld [vmem:[%s854_s3 + $0x20] sm:$0xff]   ;;  %v657_v31 = vld [vmem:[%s854_s3 + $0x68] sm:$0xff]  }
   0xb   :  { %166 = vmatpush1.bf16.msra.mxu0 %v627_v6  ;;  %581 = vmatpush3.bf16.msra.mxu1 %v650_v16  ;;  %v654_v28 = vld [vmem:[%s854_s3 + $0x18] sm:$0xff]   ;;  %v658_v32 = vld [vmem:[%s854_s3 + $0x28] sm:$0xff]   ;;  %v659_v33 = vld [vmem:[%s854_s3 + $0x70] sm:$0xff]  }
   0xc   :  { %167 = vmatprep.subr.bf16.mxu0 %v628_v7  ;;  %582 = vmatprep.subr.bf16.mxu1 %v651_v17  ;;  %v660_v34 = vld [vmem:[%s854_s3 + $0x30] sm:$0xff]   ;;  %v661_v35 = vld [vmem:[%s854_s3 + $0x78] sm:$0xff]   ;;  %v45_v40 = vld [vmem:[%s855_s2] sm:$0x3] }
   0xd   :  { %v662_v36 = vld [vmem:[%s854_s3 + $0x38] sm:$0xff]   ;;  %v50_v42 = vrot.slane %v45_v40, %v49_v39  ;;  %v54_v43 = vrot.slane %v45_v40, %v53_v41  ;;  %v522_v40 = vld [vmem:[%s856_s4] ss:$0 sm:$0xff] }
   0xf   :  { %168 = vmatpush1.bf16.msra.mxu0 %v630_v8  ;;  %583 = vmatpush3.bf16.msra.mxu1 %v652_v19 }
  0x10   :  { %169 = vmatprep.subr.bf16.mxu0 %v631_v9  ;;  %584 = vmatprep.subr.bf16.mxu1 %v653_v27 }
  0x13   :  { %170 = vmatpush1.bf16.msra.mxu0 %v633_v10  ;;  %585 = vmatpush3.bf16.msra.mxu1 %v654_v28 }
  0x14   :  { %171 = vmatprep.subr.bf16.mxu0 %v634_v11  ;;  %586 = vmatprep.subr.bf16.mxu1 %v655_v29 }
  0x17   :  { %172 = vmatpush1.bf16.msra.mxu0 %v636_v14  ;;  %587 = vmatpush3.bf16.msra.mxu1 %v656_v30 }
  0x18   :  { %173 = vmatprep.subr.bf16.mxu0 %v637_v18  ;;  %588 = vmatprep.subr.bf16.mxu1 %v657_v31 }
  0x1b   :  { %174 = vmatpush1.bf16.msra.mxu0 %v639_v20  ;;  %589 = vmatpush3.bf16.msra.mxu1 %v658_v32 }
  0x1c   :  { %175 = vmatprep.subr.bf16.mxu0 %v640_v21  ;;  %590 = vmatprep.subr.bf16.mxu1 %v659_v33 }
  0x1f   :  { %176 = vmatpush1.bf16.msra.mxu0 %v642_v22  ;;  %591 = vmatpush3.bf16.msra.mxu1 %v660_v34 }
  0x20   :  { %592 = vmatprep.subr.bf16.mxu1 %v661_v35 }
  0x22   :  { %194 = vmatmul.mubr.bf16.vlgmr.msra.gmra.mrb[0].mxu0 %v643_v23 }
  0x23   :  { %203 = vmatprep.mubr.bf16.mxu0 %v695_v1  ;;  %593 = vmatpush3.bf16.msra.mxu1 %v662_v36 }
  0x2a   :  { %204 = vmatmul.mubr.bf16.gmra.mrb[4].mxu0 %v644_v24 }
  0x2b   :  { %213 = vmatprep.mubr.bf16.mxu0 %v695_v1 }
  0x32   :  { %214 = vmatmul.mubr.bf16.gmra.mrb[8].mxu0 %v645_v25 }
  0x33   :  { %223 = vmatprep.mubr.bf16.mxu0 %v695_v1 }
  0x3a   :  { %224 = vmatmul.mubr.bf16.gmra.mrb[12].mxu0 %v646_v26 }
  0xf5   :  { %v195_v44 = vpop.f32.mrb[0].mxu0 }
  0xf6   :  { %v196_v45 = vadd.f32 %v195_v44, %v50_v42  ;;  %v197_v46 = vpop.f32.mrb[1].mxu0 }
  0xf7   :  { %v198_v47 = vadd.f32 %v197_v46, %v54_v43  ;;  %v199_v48 = vpop.f32.mrb[2].mxu0 }
  0xf8   :  { %663 = vtanh.f32 %v196_v45  ;;  %v200_v49 = vadd.f32 %v199_v48, %v50_v42  ;;  %v201_v50 = vpop.f32.mrb[3].mxu0 }
  0xf9   :  { %665 = vtanh.f32 %v198_v47  ;;  %v202_v51 = vadd.f32 %v201_v50, %v54_v43 }
  0xfa   :  { %667 = vtanh.f32 %v200_v49 }
  0xfb   :  { %669 = vtanh.f32 %v202_v51 }
  0xfd   :  { %v205_v52 = vpop.f32.mrb[4].mxu0 }
  0xfe   :  { %v206_v53 = vadd.f32 %v205_v52, %v50_v42  ;;  %v207_v54 = vpop.f32.mrb[5].mxu0 }
  0xff   :  { %v208_v55 = vadd.f32 %v207_v54, %v54_v43  ;;  %v209_v56 = vpop.f32.mrb[6].mxu0 }
 0x100   :  { %671 = vtanh.f32 %v206_v53  ;;  %v210_v57 = vadd.f32 %v209_v56, %v50_v42  ;;  %v211_v58 = vpop.f32.mrb[7].mxu0 }
 0x101   :  { %673 = vtanh.f32 %v208_v55  ;;  %v212_v59 = vadd.f32 %v211_v58, %v54_v43 }
 0x102   :  { %v664_v60 = vpop.eup %663  ;;  %675 = vtanh.f32 %v210_v57 }
 0x103   :  { %v666_v61 = vpop.eup %665  ;;  %677 = vtanh.f32 %v212_v59 }
 0x104   :  { %v668_v62 = vpop.eup %667 }
 0x105   :  { %v670_v63 = vpop.eup %669  ;;  %v215_v0 = vpop.f32.mrb[8].mxu0  ;;  %v250_v1 = vpack.c.bf16 %v668_v62, %v664_v60 }
 0x106   :  { %v216_v2 = vadd.f32 %v215_v0, %v50_v42  ;;  %v217_v3 = vpop.f32.mrb[9].mxu0  ;;  %v251_v4 = vpack.c.bf16 %v670_v63, %v666_v61 }
 0x107   :  { %v218_v5 = vadd.f32 %v217_v3, %v54_v43  ;;  %v219_v6 = vpop.f32.mrb[10].mxu0 }
 0x108   :  { %679 = vtanh.f32 %v216_v2  ;;  %v220_v7 = vadd.f32 %v219_v6, %v50_v42  ;;  %v221_v8 = vpop.f32.mrb[11].mxu0  ;;  %425 = vmatprep.mubr.bf16.mxu1 %v251_v4 }
 0x109   :  { %681 = vtanh.f32 %v218_v5  ;;  %v222_v9 = vadd.f32 %v221_v8, %v54_v43  ;;  %426 = vmatmul.mubr.bf16.vlgmr.msra.gmra.mrb[0].mxu1 %v250_v1 }
 0x10a   :  { %v672_v10 = vpop.eup %671  ;;  %683 = vtanh.f32 %v220_v7 }
 0x10b   :  { %v674_v11 = vpop.eup %673  ;;  %685 = vtanh.f32 %v222_v9 }
 0x10c   :  { %v676_v12 = vpop.eup %675 }
 0x10d   :  { %v678_v13 = vpop.eup %677  ;;  %v225_v14 = vpop.f32.mrb[12].mxu0  ;;  %v252_v15 = vpack.c.bf16 %v676_v12, %v672_v10 }
 0x10e   :  { %v226_v16 = vadd.f32 %v225_v14, %v50_v42  ;;  %v227_v17 = vpop.f32.mrb[13].mxu0  ;;  %v253_v18 = vpack.c.bf16 %v678_v13, %v674_v11 }
 0x10f   :  { %v228_v19 = vadd.f32 %v227_v17, %v54_v43  ;;  %v229_v20 = vpop.f32.mrb[14].mxu0 }
 0x110   :  { %687 = vtanh.f32 %v226_v16  ;;  %v230_v21 = vadd.f32 %v229_v20, %v50_v42  ;;  %v231_v22 = vpop.f32.mrb[15].mxu0  ;;  %433 = vmatprep.mubr.bf16.mxu1 %v253_v18 }
 0x111   :  { %689 = vtanh.f32 %v228_v19  ;;  %v232_v23 = vadd.f32 %v231_v22, %v54_v43  ;;  %434 = vmatmul.mubr.bf16.gmra.mrb[4].mxu1 %v252_v15 }
 0x112   :  { %v680_v24 = vpop.eup %679  ;;  %691 = vtanh.f32 %v230_v21 }
 0x113   :  { %v682_v25 = vpop.eup %681  ;;  %693 = vtanh.f32 %v232_v23 }
 0x114   :  { %v684_v26 = vpop.eup %683 }
 0x115   :  { %v686_v27 = vpop.eup %685  ;;  %v254_v28 = vpack.c.bf16 %v684_v26, %v680_v24 }
 0x116   :  { %v255_v29 = vpack.c.bf16 %v686_v27, %v682_v25 }
 0x118   :  { %441 = vmatprep.mubr.bf16.mxu1 %v255_v29 }
 0x119   :  { %442 = vmatmul.mubr.bf16.gmra.mrb[8].mxu1 %v254_v28 }
 0x11a   :  { %v688_v30 = vpop.eup %687 }
 0x11b   :  { %v690_v31 = vpop.eup %689 }
 0x11c   :  { %v692_v32 = vpop.eup %691 }
 0x11d   :  { %v694_v33 = vpop.eup %693  ;;  %v256_v34 = vpack.c.bf16 %v692_v32, %v688_v30 }
 0x11e   :  { %v257_v35 = vpack.c.bf16 %v694_v33, %v690_v31 }
 0x120   :  { %449 = vmatprep.mubr.bf16.mxu1 %v257_v35 }
 0x121   :  { %450 = vmatmul.mubr.bf16.gmra.mrb[12].mxu1 %v256_v34 }
 0x1dc   :  { %v594_v36 = vpop.f32.mrb[0].mxu1 }
 0x1dd   :  { %v595_v37 = vpop.f32.mrb[1].mxu1 }
 0x1de   :  { %v596_v38 = vadd.f32 %v595_v37, %v594_v36  ;;  %v597_v39 = vpop.f32.mrb[2].mxu1 }
 0x1df   :  { %v598_v41 = vpop.f32.mrb[3].mxu1 }
 0x1e0   :  { %v599_v42 = vadd.f32 %v598_v41, %v597_v39  ;;  %v428_v43 = vadd.f32 %v596_v38, %v522_v40 }
 0x1e2   :  { %v431_v44 = vadd.f32 %v599_v42, %v522_v40 }
 0x1e4   :  { %v558_v45 = vpack.c.bf16 %v431_v44, %v428_v43  ;;  %v600_v46 = vpop.f32.mrb[4].mxu1 }
 0x1e5   :  { %v601_v47 = vpop.f32.mrb[5].mxu1 }
 0x1e6   :  { %559 = vst [vmem:[%s857_s5] sm:$0xff] %v558_v45   ;;  %v602_v48 = vadd.f32 %v601_v47, %v600_v46  ;;  %v603_v49 = vpop.f32.mrb[6].mxu1 }
 0x1e7   :  { %v604_v50 = vpop.f32.mrb[7].mxu1 }
 0x1e8   :  { %v605_v51 = vadd.f32 %v604_v50, %v603_v49  ;;  %v436_v52 = vadd.f32 %v602_v48, %v522_v40 }
 0x1ea   :  { %v439_v53 = vadd.f32 %v605_v51, %v522_v40 }
 0x1ec   :  { %v563_v54 = vpack.c.bf16 %v439_v53, %v436_v52  ;;  %v606_v55 = vpop.f32.mrb[8].mxu1 }
 0x1ed   :  { %v607_v56 = vpop.f32.mrb[9].mxu1 }
 0x1ee   :  { %575 = vst [vmem:[%s857_s5 + $0x8] sm:$0xff] %v563_v54   ;;  %v608_v57 = vadd.f32 %v607_v56, %v606_v55  ;;  %v609_v58 = vpop.f32.mrb[10].mxu1 }
 0x1ef   :  { %v610_v59 = vpop.f32.mrb[11].mxu1 }
 0x1f0   :  { %v611_v60 = vadd.f32 %v610_v59, %v609_v58  ;;  %v444_v61 = vadd.f32 %v608_v57, %v522_v40 }
 0x1f2   :  { %v447_v62 = vadd.f32 %v611_v60, %v522_v40 }
 0x1f4   :  { %v568_v63 = vpack.c.bf16 %v447_v62, %v444_v61  ;;  %v612_v0 = vpop.f32.mrb[12].mxu1 }
 0x1f5   :  { %v613_v1 = vpop.f32.mrb[13].mxu1 }
 0x1f6   :  { %576 = vst [vmem:[%s857_s5 + $0x10] sm:$0xff] %v568_v63   ;;  %v614_v2 = vadd.f32 %v613_v1, %v612_v0  ;;  %v615_v3 = vpop.f32.mrb[14].mxu1 }
 0x1f7   :  { %v616_v4 = vpop.f32.mrb[15].mxu1 }
 0x1f8   :  { %v617_v5 = vadd.f32 %v616_v4, %v615_v3  ;;  %v452_v6 = vadd.f32 %v614_v2, %v522_v40 }
 0x1fa   :  { %v455_v7 = vadd.f32 %v617_v5, %v522_v40 }
 0x1fc   :  { %v573_v8 = vpack.c.bf16 %v455_v7, %v452_v6 }
 0x1fe   :  { %577 = vst [vmem:[%s857_s5 + $0x18] sm:$0xff] %v573_v8  }

</bundles_post_ra>
